<compile_context>
chip_gen: v5e
topology: v5e:2x2
jax: 0.10.0
libtpu: 0.0.40
codegen_flags: <defaults>
</compile_context>

<pallas_src>
import functools
import numpy as np
import jax
import jax.numpy as jnp
from jax.experimental import pallas as pl
from jax.experimental.pallas import tpu as pltpu


def _round_up(x, m):
    return ((x + m - 1) // m) * m


def _kernel_offsets(ksize):
    half = ksize // 2
    return [(dz, dy, dx)
            for dz in range(-half, half + 1)
            for dy in range(-half, half + 1)
            for dx in range(-half, half + 1)]


# ----------------------------------------------------------------------------
# Pallas kernel: per output tile, loop over kernel offsets:
#   gather tile_m input rows (row indices from the SMEM-prefetched table),
#   accumulate  out += gathered(bf16) @ W[k](bf16)  in f32 directly in out_ref,
#   then bias + ReLU epilogue.
# ----------------------------------------------------------------------------
def _subm_conv_gather_kernel(gidx_ref,   # SMEM (kvol, m_pad) int32 (scalar prefetch)
                             feat_ref,   # VMEM (n_pad, cin_pad) f32, resident
                             w_ref,      # VMEM (kvol, cin_pad, cout_pad) bf16, resident
                             b_ref,      # VMEM (1, cout_pad) f32
                             out_ref,    # VMEM (tile_m, cout_pad) f32
                             gbuf_ref,   # VMEM scratch (tile_m, cin_pad) f32
                             *, apply_relu):
    tile_m = out_ref.shape[0]
    kvol = w_ref.shape[0]
    row0 = pl.program_id(0) * tile_m

    out_ref[...] = jnp.zeros_like(out_ref)

    def offset_body(k, carry):
        # Gather tile_m rows of the resident feature matrix for this offset.
        # Sentinel indices point at a guaranteed all-zero padding row, so no
        # validity mask is needed.
        def gather_row(i, c):
            src = gidx_ref[k, row0 + i]
            gbuf_ref[pl.ds(i, 1), :] = feat_ref[pl.ds(src, 1), :]
            return c
        jax.lax.fori_loop(0, tile_m, gather_row, 0, unroll=True)

        out_ref[...] += jnp.dot(gbuf_ref[...].astype(jnp.bfloat16), w_ref[k],
                                preferred_element_type=jnp.float32)
        return carry

    jax.lax.fori_loop(0, kvol, offset_body, 0)

    o = out_ref[...] + b_ref[...]
    if apply_relu:
        o = jnp.maximum(o, 0.0)
    out_ref[...] = o


def subm_conv_pallas(gather_idx, feats, weight, bias, tile_m, apply_relu=True):
    """gather_idx: (kvol, m_pad) int32 (sentinel = zero row); feats: (n_pad, cin_pad)
    f32; weight: (kvol, cin_pad, cout_pad) bf16; bias: (1, cout_pad) f32.
    Returns (m_pad, cout_pad) f32."""
    kvol, m_pad = gather_idx.shape
    n_pad, cin_pad = feats.shape
    cout_pad = weight.shape[-1]
    assert m_pad % tile_m == 0

    kernel = functools.partial(_subm_conv_gather_kernel, apply_relu=apply_relu)
    return pl.pallas_call(
        kernel,
        out_shape=jax.ShapeDtypeStruct((m_pad, cout_pad), jnp.float32),
        grid_spec=pltpu.PrefetchScalarGridSpec(
            num_scalar_prefetch=1,              # gather table -> SMEM
            grid=(m_pad // tile_m,),            # single, fully parallel axis
            in_specs=[
                # resident feature matrix (constant index map -> single DMA)
                pl.BlockSpec((n_pad, cin_pad), lambda mi, gidx: (0, 0)),
                # resident fused weight, indexed by k inside the kernel
                pl.BlockSpec((kvol, cin_pad, cout_pad), lambda mi, gidx: (0, 0, 0)),
                # bias
                pl.BlockSpec((1, cout_pad), lambda mi, gidx: (0, 0)),
            ],
            out_specs=pl.BlockSpec((tile_m, cout_pad), lambda mi, gidx: (mi, 0)),
            scratch_shapes=[pltpu.VMEM((tile_m, cin_pad), jnp.float32)],
        ),
        compiler_params=pltpu.CompilerParams(
            dimension_semantics=("parallel",)),
    )(gather_idx, feats, weight, bias)


# ----------------------------------------------------------------------------
# Rulebook (spconv_index equivalent for a subm conv), fully vectorized numpy:
# gather_idx[k, m] = input row whose coordinate == out_coord[m] + offset[k]
# (or `sentinel`, a padded zero row).  For subm, out coords == in coords.
# ----------------------------------------------------------------------------
def build_subm_gather_table(coors, spatial_shape, ksize, m_pad, sentinel):
    coors = np.asarray(coors, np.int64)
    n = coors.shape[0]
    Z, Y, X = (int(s) for s in spatial_shape)
    B = int(coors[:, 0].max()) + 1 if n else 1

    # dense coordinate -> row LUT (vectorized; no Python dict loop)
    lin = ((coors[:, 0] * Z + coors[:, 1]) * Y + coors[:, 2]) * X + coors[:, 3]
    lut = np.full(B * Z * Y * X, -1, np.int64)
    lut[lin] = np.arange(n)

    offsets = np.asarray(_kernel_offsets(ksize), np.int64)        # (kvol, 3)
    kvol = offsets.shape[0]

    nb = coors[None, :, 1:4] + offsets[:, None, :]                # (kvol, n, 3)
    valid = ((nb[..., 0] >= 0) & (nb[..., 0] < Z) &
             (nb[..., 1] >= 0) & (nb[..., 1] < Y) &
             (nb[..., 2] >= 0) & (nb[..., 2] < X))
    nb_lin = ((coors[None, :, 0] * Z + nb[..., 0]) * Y + nb[..., 1]) * X + nb[..., 2]
    src = lut[np.where(valid, nb_lin, 0)]
    src = np.where(valid & (src >= 0), src, sentinel)             # (kvol, n)

    tbl = np.full((kvol, m_pad), sentinel, np.int32)
    tbl[:, :n] = src.astype(np.int32)
    return tbl


# ----------------------------------------------------------------------------
# InferSpConvModule equivalent (subm 3x3x3 conv + fused BN + ReLU)
# ----------------------------------------------------------------------------
class InferSpConvModuleJax:
    def __init__(self, conv_weight, bn_params, ksize, c_in, c_out,
                 index_name, max_num_act_out, tile_m=128):
        # fused_weight_bias: exact reproduction of the torch module's math
        # (std = sqrt(running_var), no eps -- matches the reference module).
        var, mean, nw, nb = bn_params
        std = np.sqrt(var)
        w = conv_weight / std[:, None, None, None, None] * nw[:, None, None, None, None]
        b = nb - mean / std * nw
        o, i = w.shape[0], w.shape[4]
        kvol = w.shape[1] * w.shape[2] * w.shape[3]
        w = w.reshape(o, kvol, i).transpose(1, 2, 0)        # (kvol, Cin, Cout)

        # pad channels to 128 lanes; store weight in bf16 (MXU operand dtype)
        self.cin_pad = _round_up(i, 128)
        self.cout_pad = _round_up(o, 128)
        w_pad = np.zeros((kvol, self.cin_pad, self.cout_pad), np.float32)
        w_pad[:, :i, :o] = w
        self.weight = jnp.asarray(w_pad, jnp.bfloat16)
        b_pad = np.zeros((1, self.cout_pad), np.float32)
        b_pad[0, :o] = b
        self.bias = jnp.asarray(b_pad, jnp.float32)

        self.ksize = ksize
        self.kvol = kvol
        self.c_in, self.c_out = c_in, c_out
        self.index_name = index_name
        self.max_num_act_out = max_num_act_out
        self.tile_m = tile_m

    def forward(self, inp):
        in_feats, in_coors, num_act_in, in_spatial_shape, index_dict = inp
        if self.index_name in index_dict:
            # NOTE: like the original module, the cache is keyed by name only;
            # reusing a name with different coordinates silently reuses a stale
            # rulebook.
            indices = index_dict[self.index_name]
        else:
            m_req = max(self.max_num_act_out, int(num_act_in))
            # >= 2 output tiles so both v7x TensorCores / megacore get work
            tile_m = min(self.tile_m, _round_up(-(-m_req // 2), 8))
            m_pad = _round_up(m_req, tile_m)
            n_pad = _round_up(int(num_act_in) + 1, 8)       # +1: guaranteed zero row
            sentinel = n_pad - 1
            gidx = build_subm_gather_table(
                np.asarray(in_coors)[:num_act_in], in_spatial_shape,
                self.ksize, m_pad, sentinel)
            # subm: out coords / counts / spatial shape == input's
            indices = (jnp.asarray(gidx), n_pad, tile_m,
                       in_coors, num_act_in, in_spatial_shape,
                       in_coors, num_act_in, in_spatial_shape)
            index_dict[self.index_name] = indices
        (gather_idx, n_pad, tile_m, out_coors, num_act_out, out_spatial_shape,
         _in_coors, _num_act_in, _in_spatial_shape) = indices

        # f32 resident features (dynamic-row gather in 32-bit is the robust
        # layout); the kernel casts the gathered tile to bf16 for the MXU.
        feats_pad = (jnp.zeros((n_pad, self.cin_pad), jnp.float32)
                     .at[:num_act_in, :self.c_in].set(in_feats[:num_act_in]))

        out = subm_conv_pallas(gather_idx, feats_pad, self.weight, self.bias,
                               tile_m, apply_relu=True)
        out_feats = out[:num_act_out, :self.c_out]
        # TODO(synk): conv.inverse / non-subm (strided) index generation not modeled.
        return out_feats, out_coors, num_act_out, out_spatial_shape, index_dict


# ----------------------------------------------------------------------------
if __name__ == "__main__":
    C_IN, C_OUT, KSIZE = 4, 8, 3
    KVOL = KSIZE ** 3
    N_ACT = 20
    MAX_OUT = 32
    SPATIAL = (8, 8, 8)

    key = jax.random.PRNGKey(0)
    k1, k2, k3, k4, k5, k6, k7 = jax.random.split(key, 7)

    # deterministic unique active voxel coordinates (batch, z, y, x)
    flat = np.asarray(jax.random.choice(k1, SPATIAL[0] * SPATIAL[1] * SPATIAL[2],
                                        shape=(N_ACT,), replace=False))
    coors = np.stack([np.zeros(N_ACT, np.int32),
                      (flat // (SPATIAL[1] * SPATIAL[2])).astype(np.int32),
                      ((flat // SPATIAL[2]) % SPATIAL[1]).astype(np.int32),
                      (flat % SPATIAL[2]).astype(np.int32)], axis=1)

    in_feats = jax.random.normal(k2, (N_ACT, C_IN), dtype=jnp.float32)

    # deterministic conv + BN parameters (spconv weight layout: (O, kz, ky, kx, I))
    conv_w = np.asarray(jax.random.normal(k3, (C_OUT, KSIZE, KSIZE, KSIZE, C_IN))) * 0.1
    bn_var = np.asarray(jax.random.uniform(k4, (C_OUT,), minval=0.5, maxval=1.5))
    bn_mean = np.asarray(jax.random.normal(k5, (C_OUT,))) * 0.1
    bn_w = np.asarray(jax.random.uniform(k6, (C_OUT,), minval=0.8, maxval=1.2))
    bn_b = np.asarray(jax.random.normal(k7, (C_OUT,))) * 0.1

    mod = InferSpConvModuleJax(conv_w, (bn_var, bn_mean, bn_w, bn_b),
                               KSIZE, C_IN, C_OUT, "subm0", MAX_OUT)

    inp = (in_feats, coors, N_ACT, SPATIAL, {})
    out_feats, out_coors, num_act_out, out_spatial_shape, index_dict = mod.forward(inp)
    out_feats = jax.block_until_ready(out_feats)

    # Independent numpy reference in the gather formulation (out coord + offset
    # -> in coord), using bf16-quantized operands (MXU input dtype) with f32
    # accumulation — matching the kernel's numerics.
    w_q = np.asarray(mod.weight.astype(jnp.float32))[:, :C_IN, :C_OUT]   # bf16-rounded
    b_q = np.asarray(mod.bias)[:, :C_OUT]
    feat_q = np.asarray(jnp.asarray(in_feats).astype(jnp.bfloat16).astype(jnp.float32))
    offsets = _kernel_offsets(KSIZE)
    coord_map = {tuple(int(v) for v in c): i for i, c in enumerate(coors)}
    ref = np.zeros((N_ACT, C_OUT), np.float32)
    for j, c in enumerate(coors):
        b0, z, y, x = (int(v) for v in c)
        for k, (dz, dy, dx) in enumerate(offsets):
            i = coord_map.get((b0, z + dz, y + dy, x + dx))
            if i is not None:
                ref[j] += feat_q[i] @ w_q[k]
    ref = np.maximum(ref + b_q, 0.0)

    np.testing.assert_allclose(np.asarray(out_feats), ref, rtol=1e-2, atol=1e-2)
    print("KERNEL_OK")
</pallas_src>

<mosaic_0001>
module attributes {stable_mosaic.version = 11 : i64} {
  func.func @_subm_conv_gather_kernel(%arg0: i32, %arg1: memref<27x32xi32, #tpu.memory_space<smem>>, %arg2: memref<24x128xf32, #tpu.memory_space<vmem>>, %arg3: memref<27x128x128xbf16, #tpu.memory_space<vmem>>, %arg4: memref<1x128xf32, #tpu.memory_space<vmem>>, %arg5: memref<16x128xf32, #tpu.memory_space<vmem>>, %arg6: memref<16x128xf32, #tpu.memory_space<vmem>>) attributes {dimension_semantics = [#tpu.dimension_semantics<parallel>], iteration_bounds = array<i64: 2>, scalar_prefetch = 1 : i64, scratch_operands = 1 : i64, tpu.core_type = #tpu.core_type<tc>, window_params = [{pipeline_mode = #tpu.pipeline_mode<synchronous>, transform_indices = @transform_0, window_bounds = array<i64: 24, 128>}, {pipeline_mode = #tpu.pipeline_mode<synchronous>, transform_indices = @transform_1, window_bounds = array<i64: 27, 128, 128>}, {pipeline_mode = #tpu.pipeline_mode<synchronous>, transform_indices = @transform_2, window_bounds = array<i64: 1, 128>}, {transform_indices = @transform_3, window_bounds = array<i64: 16, 128>}]} {
    %c16_i32 = arith.constant 16 : i32
    %0 = arith.muli %arg0, %c16_i32 : i32
    %cst = arith.constant 0.000000e+00 : f32
    %1 = vector.broadcast %cst : f32 to vector<16x128xf32>
    %c0 = arith.constant 0 : index
    %c0_0 = arith.constant 0 : index
    %2 = vector.load %arg5[%c0, %c0_0] : memref<16x128xf32, #tpu.memory_space<vmem>>, vector<16x128xf32>
    tpu.vector_store %arg5[%c0, %c0_0], %1 {strides = array<i32>} : memref<16x128xf32, #tpu.memory_space<vmem>>, vector<16x128xf32>,
    %c0_i32 = arith.constant 0 : i32
    %c27_i32 = arith.constant 27 : i32
    %3 = arith.addi %c0_i32, %c27_i32 : i32
    %c1_i32 = arith.constant 1 : i32
    scf.for %arg7 = %c0_i32 to %3 step %c1_i32  : i32 {
      %c0_i32_9 = arith.constant 0 : i32
      %11 = arith.addi %0, %c0_i32_9 : i32
      %12 = arith.index_cast %arg7 : i32 to index
      %13 = arith.index_cast %11 : i32 to index
      %14 = memref.load %arg1[%12, %13] : memref<27x32xi32, #tpu.memory_space<smem>>
      %15 = arith.index_cast %14 : i32 to index
      %c0_10 = arith.constant 0 : index
      %16 = vector.load %arg2[%15, %c0_10] : memref<24x128xf32, #tpu.memory_space<vmem>>, vector<1x128xf32>
      %17 = arith.index_cast %c0_i32_9 : i32 to index
      %c0_11 = arith.constant 0 : index
      %18 = vector.load %arg6[%17, %c0_11] : memref<16x128xf32, #tpu.memory_space<vmem>>, vector<1x128xf32>
      tpu.vector_store %arg6[%17, %c0_11], %16 {strides = array<i32>} : memref<16x128xf32, #tpu.memory_space<vmem>>, vector<1x128xf32>,
      %c1_i32_12 = arith.constant 1 : i32
      %19 = arith.addi %0, %c1_i32_12 : i32
      %20 = arith.index_cast %arg7 : i32 to index
      %21 = arith.index_cast %19 : i32 to index
      %22 = memref.load %arg1[%20, %21] : memref<27x32xi32, #tpu.memory_space<smem>>
      %23 = arith.index_cast %22 : i32 to index
      %c0_13 = arith.constant 0 : index
      %24 = vector.load %arg2[%23, %c0_13] : memref<24x128xf32, #tpu.memory_space<vmem>>, vector<1x128xf32>
      %25 = arith.index_cast %c1_i32_12 : i32 to index
      %c0_14 = arith.constant 0 : index
      %26 = vector.load %arg6[%25, %c0_14] : memref<16x128xf32, #tpu.memory_space<vmem>>, vector<1x128xf32>
      tpu.vector_store %arg6[%25, %c0_14], %24 {strides = array<i32>} : memref<16x128xf32, #tpu.memory_space<vmem>>, vector<1x128xf32>,
      %c2_i32 = arith.constant 2 : i32
      %27 = arith.addi %0, %c2_i32 : i32
      %28 = arith.index_cast %arg7 : i32 to index
      %29 = arith.index_cast %27 : i32 to index
      %30 = memref.load %arg1[%28, %29] : memref<27x32xi32, #tpu.memory_space<smem>>
      %31 = arith.index_cast %30 : i32 to index
      %c0_15 = arith.constant 0 : index
      %32 = vector.load %arg2[%31, %c0_15] : memref<24x128xf32, #tpu.memory_space<vmem>>, vector<1x128xf32>
      %33 = arith.index_cast %c2_i32 : i32 to index
      %c0_16 = arith.constant 0 : index
      %34 = vector.load %arg6[%33, %c0_16] : memref<16x128xf32, #tpu.memory_space<vmem>>, vector<1x128xf32>
      tpu.vector_store %arg6[%33, %c0_16], %32 {strides = array<i32>} : memref<16x128xf32, #tpu.memory_space<vmem>>, vector<1x128xf32>,
      %c3_i32 = arith.constant 3 : i32
      %35 = arith.addi %0, %c3_i32 : i32
      %36 = arith.index_cast %arg7 : i32 to index
      %37 = arith.index_cast %35 : i32 to index
      %38 = memref.load %arg1[%36, %37] : memref<27x32xi32, #tpu.memory_space<smem>>
      %39 = arith.index_cast %38 : i32 to index
      %c0_17 = arith.constant 0 : index
      %40 = vector.load %arg2[%39, %c0_17] : memref<24x128xf32, #tpu.memory_space<vmem>>, vector<1x128xf32>
      %41 = arith.index_cast %c3_i32 : i32 to index
      %c0_18 = arith.constant 0 : index
      %42 = vector.load %arg6[%41, %c0_18] : memref<16x128xf32, #tpu.memory_space<vmem>>, vector<1x128xf32>
      tpu.vector_store %arg6[%41, %c0_18], %40 {strides = array<i32>} : memref<16x128xf32, #tpu.memory_space<vmem>>, vector<1x128xf32>,
      %c4_i32 = arith.constant 4 : i32
      %43 = arith.addi %0, %c4_i32 : i32
      %44 = arith.index_cast %arg7 : i32 to index
      %45 = arith.index_cast %43 : i32 to index
      %46 = memref.load %arg1[%44, %45] : memref<27x32xi32, #tpu.memory_space<smem>>
      %47 = arith.index_cast %46 : i32 to index
      %c0_19 = arith.constant 0 : index
      %48 = vector.load %arg2[%47, %c0_19] : memref<24x128xf32, #tpu.memory_space<vmem>>, vector<1x128xf32>
      %49 = arith.index_cast %c4_i32 : i32 to index
      %c0_20 = arith.constant 0 : index
      %50 = vector.load %arg6[%49, %c0_20] : memref<16x128xf32, #tpu.memory_space<vmem>>, vector<1x128xf32>
      tpu.vector_store %arg6[%49, %c0_20], %48 {strides = array<i32>} : memref<16x128xf32, #tpu.memory_space<vmem>>, vector<1x128xf32>,
      %c5_i32 = arith.constant 5 : i32
      %51 = arith.addi %0, %c5_i32 : i32
      %52 = arith.index_cast %arg7 : i32 to index
      %53 = arith.index_cast %51 : i32 to index
      %54 = memref.load %arg1[%52, %53] : memref<27x32xi32, #tpu.memory_space<smem>>
      %55 = arith.index_cast %54 : i32 to index
      %c0_21 = arith.constant 0 : index
      %56 = vector.load %arg2[%55, %c0_21] : memref<24x128xf32, #tpu.memory_space<vmem>>, vector<1x128xf32>
      %57 = arith.index_cast %c5_i32 : i32 to index
      %c0_22 = arith.constant 0 : index
      %58 = vector.load %arg6[%57, %c0_22] : memref<16x128xf32, #tpu.memory_space<vmem>>, vector<1x128xf32>
      tpu.vector_store %arg6[%57, %c0_22], %56 {strides = array<i32>} : memref<16x128xf32, #tpu.memory_space<vmem>>, vector<1x128xf32>,
      %c6_i32 = arith.constant 6 : i32
      %59 = arith.addi %0, %c6_i32 : i32
      %60 = arith.index_cast %arg7 : i32 to index
      %61 = arith.index_cast %59 : i32 to index
      %62 = memref.load %arg1[%60, %61] : memref<27x32xi32, #tpu.memory_space<smem>>
      %63 = arith.index_cast %62 : i32 to index
      %c0_23 = arith.constant 0 : index
      %64 = vector.load %arg2[%63, %c0_23] : memref<24x128xf32, #tpu.memory_space<vmem>>, vector<1x128xf32>
      %65 = arith.index_cast %c6_i32 : i32 to index
      %c0_24 = arith.constant 0 : index
      %66 = vector.load %arg6[%65, %c0_24] : memref<16x128xf32, #tpu.memory_space<vmem>>, vector<1x128xf32>
      tpu.vector_store %arg6[%65, %c0_24], %64 {strides = array<i32>} : memref<16x128xf32, #tpu.memory_space<vmem>>, vector<1x128xf32>,
      %c7_i32 = arith.constant 7 : i32
      %67 = arith.addi %0, %c7_i32 : i32
      %68 = arith.index_cast %arg7 : i32 to index
      %69 = arith.index_cast %67 : i32 to index
      %70 = memref.load %arg1[%68, %69] : memref<27x32xi32, #tpu.memory_space<smem>>
      %71 = arith.index_cast %70 : i32 to index
      %c0_25 = arith.constant 0 : index
      %72 = vector.load %arg2[%71, %c0_25] : memref<24x128xf32, #tpu.memory_space<vmem>>, vector<1x128xf32>
      %73 = arith.index_cast %c7_i32 : i32 to index
      %c0_26 = arith.constant 0 : index
      %74 = vector.load %arg6[%73, %c0_26] : memref<16x128xf32, #tpu.memory_space<vmem>>, vector<1x128xf32>
      tpu.vector_store %arg6[%73, %c0_26], %72 {strides = array<i32>} : memref<16x128xf32, #tpu.memory_space<vmem>>, vector<1x128xf32>,
      %c8_i32 = arith.constant 8 : i32
      %75 = arith.addi %0, %c8_i32 : i32
      %76 = arith.index_cast %arg7 : i32 to index
      %77 = arith.index_cast %75 : i32 to index
      %78 = memref.load %arg1[%76, %77] : memref<27x32xi32, #tpu.memory_space<smem>>
      %79 = arith.index_cast %78 : i32 to index
      %c0_27 = arith.constant 0 : index
      %80 = vector.load %arg2[%79, %c0_27] : memref<24x128xf32, #tpu.memory_space<vmem>>, vector<1x128xf32>
      %81 = arith.index_cast %c8_i32 : i32 to index
      %c0_28 = arith.constant 0 : index
      %82 = vector.load %arg6[%81, %c0_28] : memref<16x128xf32, #tpu.memory_space<vmem>>, vector<1x128xf32>
      tpu.vector_store %arg6[%81, %c0_28], %80 {strides = array<i32>} : memref<16x128xf32, #tpu.memory_space<vmem>>, vector<1x128xf32>,
      %c9_i32 = arith.constant 9 : i32
      %83 = arith.addi %0, %c9_i32 : i32
      %84 = arith.index_cast %arg7 : i32 to index
      %85 = arith.index_cast %83 : i32 to index
      %86 = memref.load %arg1[%84, %85] : memref<27x32xi32, #tpu.memory_space<smem>>
      %87 = arith.index_cast %86 : i32 to index
      %c0_29 = arith.constant 0 : index
      %88 = vector.load %arg2[%87, %c0_29] : memref<24x128xf32, #tpu.memory_space<vmem>>, vector<1x128xf32>
      %89 = arith.index_cast %c9_i32 : i32 to index
      %c0_30 = arith.constant 0 : index
      %90 = vector.load %arg6[%89, %c0_30] : memref<16x128xf32, #tpu.memory_space<vmem>>, vector<1x128xf32>
      tpu.vector_store %arg6[%89, %c0_30], %88 {strides = array<i32>} : memref<16x128xf32, #tpu.memory_space<vmem>>, vector<1x128xf32>,
      %c10_i32 = arith.constant 10 : i32
      %91 = arith.addi %0, %c10_i32 : i32
      %92 = arith.index_cast %arg7 : i32 to index
      %93 = arith.index_cast %91 : i32 to index
      %94 = memref.load %arg1[%92, %93] : memref<27x32xi32, #tpu.memory_space<smem>>
      %95 = arith.index_cast %94 : i32 to index
      %c0_31 = arith.constant 0 : index
      %96 = vector.load %arg2[%95, %c0_31] : memref<24x128xf32, #tpu.memory_space<vmem>>, vector<1x128xf32>
      %97 = arith.index_cast %c10_i32 : i32 to index
      %c0_32 = arith.constant 0 : index
      %98 = vector.load %arg6[%97, %c0_32] : memref<16x128xf32, #tpu.memory_space<vmem>>, vector<1x128xf32>
      tpu.vector_store %arg6[%97, %c0_32], %96 {strides = array<i32>} : memref<16x128xf32, #tpu.memory_space<vmem>>, vector<1x128xf32>,
      %c11_i32 = arith.constant 11 : i32
      %99 = arith.addi %0, %c11_i32 : i32
      %100 = arith.index_cast %arg7 : i32 to index
      %101 = arith.index_cast %99 : i32 to index
      %102 = memref.load %arg1[%100, %101] : memref<27x32xi32, #tpu.memory_space<smem>>
      %103 = arith.index_cast %102 : i32 to index
      %c0_33 = arith.constant 0 : index
      %104 = vector.load %arg2[%103, %c0_33] : memref<24x128xf32, #tpu.memory_space<vmem>>, vector<1x128xf32>
      %105 = arith.index_cast %c11_i32 : i32 to index
      %c0_34 = arith.constant 0 : index
      %106 = vector.load %arg6[%105, %c0_34] : memref<16x128xf32, #tpu.memory_space<vmem>>, vector<1x128xf32>
      tpu.vector_store %arg6[%105, %c0_34], %104 {strides = array<i32>} : memref<16x128xf32, #tpu.memory_space<vmem>>, vector<1x128xf32>,
      %c12_i32 = arith.constant 12 : i32
      %107 = arith.addi %0, %c12_i32 : i32
      %108 = arith.index_cast %arg7 : i32 to index
      %109 = arith.index_cast %107 : i32 to index
      %110 = memref.load %arg1[%108, %109] : memref<27x32xi32, #tpu.memory_space<smem>>
      %111 = arith.index_cast %110 : i32 to index
      %c0_35 = arith.constant 0 : index
      %112 = vector.load %arg2[%111, %c0_35] : memref<24x128xf32, #tpu.memory_space<vmem>>, vector<1x128xf32>
      %113 = arith.index_cast %c12_i32 : i32 to index
      %c0_36 = arith.constant 0 : index
      %114 = vector.load %arg6[%113, %c0_36] : memref<16x128xf32, #tpu.memory_space<vmem>>, vector<1x128xf32>
      tpu.vector_store %arg6[%113, %c0_36], %112 {strides = array<i32>} : memref<16x128xf32, #tpu.memory_space<vmem>>, vector<1x128xf32>,
      %c13_i32 = arith.constant 13 : i32
      %115 = arith.addi %0, %c13_i32 : i32
      %116 = arith.index_cast %arg7 : i32 to index
      %117 = arith.index_cast %115 : i32 to index
      %118 = memref.load %arg1[%116, %117] : memref<27x32xi32, #tpu.memory_space<smem>>
      %119 = arith.index_cast %118 : i32 to index
      %c0_37 = arith.constant 0 : index
      %120 = vector.load %arg2[%119, %c0_37] : memref<24x128xf32, #tpu.memory_space<vmem>>, vector<1x128xf32>
      %121 = arith.index_cast %c13_i32 : i32 to index
      %c0_38 = arith.constant 0 : index
      %122 = vector.load %arg6[%121, %c0_38] : memref<16x128xf32, #tpu.memory_space<vmem>>, vector<1x128xf32>
      tpu.vector_store %arg6[%121, %c0_38], %120 {strides = array<i32>} : memref<16x128xf32, #tpu.memory_space<vmem>>, vector<1x128xf32>,
      %c14_i32 = arith.constant 14 : i32
      %123 = arith.addi %0, %c14_i32 : i32
      %124 = arith.index_cast %arg7 : i32 to index
      %125 = arith.index_cast %123 : i32 to index
      %126 = memref.load %arg1[%124, %125] : memref<27x32xi32, #tpu.memory_space<smem>>
      %127 = arith.index_cast %126 : i32 to index
      %c0_39 = arith.constant 0 : index
      %128 = vector.load %arg2[%127, %c0_39] : memref<24x128xf32, #tpu.memory_space<vmem>>, vector<1x128xf32>
      %129 = arith.index_cast %c14_i32 : i32 to index
      %c0_40 = arith.constant 0 : index
      %130 = vector.load %arg6[%129, %c0_40] : memref<16x128xf32, #tpu.memory_space<vmem>>, vector<1x128xf32>
      tpu.vector_store %arg6[%129, %c0_40], %128 {strides = array<i32>} : memref<16x128xf32, #tpu.memory_space<vmem>>, vector<1x128xf32>,
      %c15_i32 = arith.constant 15 : i32
      %131 = arith.addi %0, %c15_i32 : i32
      %132 = arith.index_cast %arg7 : i32 to index
      %133 = arith.index_cast %131 : i32 to index
      %134 = memref.load %arg1[%132, %133] : memref<27x32xi32, #tpu.memory_space<smem>>
      %135 = arith.index_cast %134 : i32 to index
      %c0_41 = arith.constant 0 : index
      %136 = vector.load %arg2[%135, %c0_41] : memref<24x128xf32, #tpu.memory_space<vmem>>, vector<1x128xf32>
      %137 = arith.index_cast %c15_i32 : i32 to index
      %c0_42 = arith.constant 0 : index
      %138 = vector.load %arg6[%137, %c0_42] : memref<16x128xf32, #tpu.memory_space<vmem>>, vector<1x128xf32>
      tpu.vector_store %arg6[%137, %c0_42], %136 {strides = array<i32>} : memref<16x128xf32, #tpu.memory_space<vmem>>, vector<1x128xf32>,
      %c16_i32_43 = arith.constant 16 : i32
      %c0_44 = arith.constant 0 : index
      %c0_45 = arith.constant 0 : index
      %139 = vector.load %arg5[%c0_44, %c0_45] : memref<16x128xf32, #tpu.memory_space<vmem>>, vector<16x128xf32>
      %c0_46 = arith.constant 0 : index
      %c0_47 = arith.constant 0 : index
      %140 = vector.load %arg6[%c0_46, %c0_47] : memref<16x128xf32, #tpu.memory_space<vmem>>, vector<16x128xf32>
      %141 = arith.truncf %140 : vector<16x128xf32> to vector<16x128xbf16>
      %142 = arith.index_cast %arg7 : i32 to index
      %c0_48 = arith.constant 0 : index
      %c0_49 = arith.constant 0 : index
      %143 = vector.load %arg3[%142, %c0_48, %c0_49] : memref<27x128x128xbf16, #tpu.memory_space<vmem>>, vector<1x128x128xbf16>
      %144 = vector.shape_cast %143 : vector<1x128x128xbf16> to vector<128x128xbf16>
      %cst_50 = arith.constant dense<0.000000e+00> : vector<16x128xf32>
      %145 = tpu.matmul %141, %144, %cst_50 {dimension_numbers = #tpu.dot_dimension_numbers<[1], [0], [0], [1], [0, 0, 1, 1], [], []>} : vector<16x128xbf16>, vector<128x128xbf16>, vector<16x128xf32> -> vector<16x128xf32>
      %146 = arith.addf %139, %145 : vector<16x128xf32>
      %c0_51 = arith.constant 0 : index
      %c0_52 = arith.constant 0 : index
      %147 = vector.load %arg5[%c0_51, %c0_52] : memref<16x128xf32, #tpu.memory_space<vmem>>, vector<16x128xf32>
      tpu.vector_store %arg5[%c0_51, %c0_52], %146 {strides = array<i32>} : memref<16x128xf32, #tpu.memory_space<vmem>>, vector<16x128xf32>,
    }
    %c27_i32_1 = arith.constant 27 : i32
    %c0_2 = arith.constant 0 : index
    %c0_3 = arith.constant 0 : index
    %4 = vector.load %arg5[%c0_2, %c0_3] : memref<16x128xf32, #tpu.memory_space<vmem>>, vector<16x128xf32>
    %c0_4 = arith.constant 0 : index
    %c0_5 = arith.constant 0 : index
    %5 = vector.load %arg4[%c0_4, %c0_5] : memref<1x128xf32, #tpu.memory_space<vmem>>, vector<1x128xf32>
    %6 = vector.broadcast %5 : vector<1x128xf32> to vector<16x128xf32>
    %7 = arith.addf %4, %6 : vector<16x128xf32>
    %cst_6 = arith.constant 0.000000e+00 : f32
    %8 = vector.broadcast %cst_6 : f32 to vector<16x128xf32>
    %9 = arith.maximumf %7, %8 : vector<16x128xf32>
    %c0_7 = arith.constant 0 : index
    %c0_8 = arith.constant 0 : index
    %10 = vector.load %arg5[%c0_7, %c0_8] : memref<16x128xf32, #tpu.memory_space<vmem>>, vector<16x128xf32>
    tpu.vector_store %arg5[%c0_7, %c0_8], %9 {strides = array<i32>} : memref<16x128xf32, #tpu.memory_space<vmem>>, vector<16x128xf32>,
    return
  }
  func.func @transform_0(%arg0: i32, %arg1: memref<27x32xi32, #tpu.memory_space<smem>>) -> (i32, i32) {
    %c0_i32 = arith.constant 0 : i32
    %c0_i32_0 = arith.constant 0 : i32
    %c0_i32_1 = arith.constant 0 : i32
    return %c0_i32, %c0_i32_0 : i32, i32
  }
  func.func @transform_1(%arg0: i32, %arg1: memref<27x32xi32, #tpu.memory_space<smem>>) -> (i32, i32, i32) {
    %c0_i32 = arith.constant 0 : i32
    %c0_i32_0 = arith.constant 0 : i32
    %c0_i32_1 = arith.constant 0 : i32
    %c0_i32_2 = arith.constant 0 : i32
    return %c0_i32, %c0_i32_0, %c0_i32_1 : i32, i32, i32
  }
  func.func @transform_2(%arg0: i32, %arg1: memref<27x32xi32, #tpu.memory_space<smem>>) -> (i32, i32) {
    %c0_i32 = arith.constant 0 : i32
    %c0_i32_0 = arith.constant 0 : i32
    %c0_i32_1 = arith.constant 0 : i32
    return %c0_i32, %c0_i32_0 : i32, i32
  }
  func.func @transform_3(%arg0: i32, %arg1: memref<27x32xi32, #tpu.memory_space<smem>>) -> (i32, i32) {
    %c0_i32 = arith.constant 0 : i32
    %c0_i32_0 = arith.constant 0 : i32
    return %arg0, %c0_i32 : i32, i32
  }
}

</mosaic_0001>

<bundles_post_ra>
// kernel: tpu_custom_call.1
= control target key start
LH: loop header
LB: loop body
LE: loop exit
PB: predicated region body
PF: predicated region fallthrough
CT: control target
= control target key end

     0   :  { %s911_s18 = smov [#allocation4]   ;;  %s1132_s0 = inlined_call_operand.hbm [shape: s32[27,32], index: 0, kind: input, shape index: {}]   ;;  %s1133_s1 = inlined_call_operand.hbm [shape: f32[24,128], index: 1, kind: input, shape index: {}]   ;;  %s1134_s2 = inlined_call_operand.hbm [shape: bf16[27,128,128], index: 2, kind: input, shape index: {}]   ;;  %s1135_s3 = inlined_call_operand.vmem [shape: f32[1,128], index: 3, kind: input, shape index: {}]   ;;  %s1136_s4 = inlined_call_operand.hbm [shape: f32[32,128], index: 4, kind: output, shape index: {}]  }
   0x1   :  { %1139 = sst [smem:[#allocation17_spill]] %s1133_s1  ;;  %s10_s17 = sshll.u32 %s1132_s0, 4  ;;  %s11_s17 = int_to_ptr.hbm [resolvable:$true] %s10_s17 }
   0x2   :  { %1140 = sst [smem:[#allocation18_spill]] %s1134_s2 }
   0x3   :  { %13 = dma.hbm_to_smem %s11_s17, 512, %s911_s18, [#allocation3] }
   0x4   :  { %877 = dma.done.wait [#allocation3], 512 }
   0x5   :  { %878 = vsyncadd [#allocation3], 4294966784 }
   0x6   :  { %16 = sfence }
   0x7   :  { %17 = vsyncpa [#allocation6], 0 }
   0x8   :  { %18 = vsyncpa [#allocation9], 0 }
   0x9   :  { %19 = vsyncpa [#allocation7], 0 }
   0xa   :  { %21 = vsyncpa [#allocation7 + $0x1], 0  ;;  %s949_s19 = smov 0   ;;  %s951_s20 = smov 0  }
   0xb   :  { %s953_s21 = smov 0   ;;  %s955_s22 = smov 0  }
   0xc LB: > { %1141 = sst [smem:[#allocation15_spill]] %s901_s21  ;;  %s970_s0 = sadd.s32 4294967295, %s905_s22   ;;  %s905_s22 = sphi %s955_s22, %s1153_s22   ;;  %s901_s21 = sphi %s953_s21, %s1150_s21   ;;  %s897_s20 = sphi %s951_s20, %s1152_s20   ;;  %s893_s19 = sphi %s949_s19, %s1151_s19  }
   0xd   : > { %s606_s23 = sadd.s32 4294967294, %s905_s22   ;;  %s974_s24 = sadd.s32 1, %s905_s22  }
   0xe   : > { %s97_s25 = sadd.s32 1, %s901_s21  ;;  %s94_s26 = ssub.s32 %s905_s22, %s974_s24 }
   0xf   : > { %p107_p0 = scmp.ne.s32.totalorder %s901_s21, %s897_s20  ;;  %p95_p1 = scmp.eq.s32.totalorder %s94_s26, 0 }
  0x10   : > { %p108_p2 = scmp.eq.s32.totalorder %s970_s0, 1  ;;  %p113_p3 = scmp.ne.s32.totalorder %s897_s20, %s893_s19 }
  0x11   : > { %p114_p4 = scmp.eq.s32.totalorder %s606_s23, 1  ;;  %p607_p7 = scmp.ge.s32.totalorder %s905_s22, 1 }
  0x12   : > { %s985_s27 = scalar_select %p95_p1, %s901_s21, %s97_s25  }
  0x13   : > { %p987_p5 = por %p108_p2, %p107_p0  ;;  %p991_p6 = por %p114_p4, %p113_p3 }
  0x14   : > { %1142 = sst [smem:[#allocation16_spill]] %s985_s27  ;;  %p121_p8 = scmp.lt.s32.totalorder %s905_s22, 3 }
  0x15   : > { %p701_p9 = scmp.eq.s32.totalorder %s970_s0, 0  ;;  %s1146_s1 = sld [smem:[#allocation17_spill]] }
  0x16   : > { %p998_p10 = pnand %p607_p7, %p121_p8  ;;  %s912_s8 = smov [#allocation5]  }
  0x17   : > { %s134_s9 = sshll.u32 %s912_s8, 4  ;;  %s1147_s2 = sld [smem:[#allocation18_spill]]  ;;  %s135_s9 = int_to_ptr.vmem [resolvable:$true] %s134_s9 }
  0x18   : > { %p690_p11 = pneg %p998_p10  ;;  %s913_s13 = smov 128  }
  0x19   : > { %s914_s14 = smov 8   ;;  %s915_s15 = smov [#allocation8]  }
  0x1a   : > { %p691_p12 = pnand %p701_p9, %p690_p11  ;;  %s148_s16 = sshll.u32 %s915_s15, 4  ;;  %s149_s16 = int_to_ptr.vmem [resolvable:$true] %s148_s16 }
  0x1b   : > { %s132_s7 = sshll.u32 %s1146_s1, 4  ;;  %s916_s17 = smov 64   ;;  %s133_s7 = int_to_ptr.hbm [resolvable:$true] %s132_s7 }
  0x1c   : > { %693 = dma.hbm_to_vmem [thread:$0]  (!%p691_p12), %s133_s7, 384, %s135_s9, [#allocation6], %s913_s13, %s913_s13, %s914_s14  }
  0x1d   : > { %s146_s12 = sshll.u32 %s1147_s2, 4  ;;  %s917_s18 = smov 4   ;;  %s147_s12 = int_to_ptr.hbm [resolvable:$true] %s146_s12 }
  0x1e   : > { %696 = dma.hbm_to_vmem [thread:$0]  (!%p691_p12), %s147_s12, 27648, %s149_s16, [#allocation9], %s916_s17, %s916_s17, %s917_s18  }
  0x1f   : > { %167 = sbr.rel (%p998_p10) target bundleno = 278 (0x116), region = 32 }
  0x24   : > { %880 = dma.done.wait (%p701_p9), [#allocation6], 384  }
  0x25   : > { %882 = vsyncadd (%p701_p9), [#allocation6], 4294966912 }
  0x26   : > { %884 = dma.done.wait (%p701_p9), [#allocation9], 27648  }
  0x27   : > { %886 = vsyncadd (%p701_p9), [#allocation9], 4294939648  ;;  %s1137_s23 = sand.u32 1, %s897_s20   ;;  %s1024_s25 = sshll.u32 %s970_s0, 4  ;;  %v918_v0 = vmov 0.0  }
  0x28   : > { %s613_s26 = sshll.u32 %s1137_s23, 4  ;;  %s1032_s5 = smov 0  }
  0x29   : > { %s1028_s30 = scalar_lea.vmem [#allocation10], %s613_s26 }
  0x2a   : > { %194 = vst [vmem:[%s1028_s30] sm:$0xff] %v918_v0 }
  0x2b   : > { %195 = vst [vmem:[%s1028_s30 + $0x8] sm:$0xff] %v918_v0 }
  0x2c LB: >> { %s202_s0 = sshra.s32 %s1024_s25, 7  ;;  %s207_s6 = sand.u32 127, %s1024_s25  ;;  %s909_s5 = sphi %s1032_s5, %s201_s5  }
  0x2d   : >> { %s670_s7 = sshll.u32 %s909_s5, 6  ;;  %s204_s8 = sadd.s32 %s909_s5, %s202_s0 }
  0x2e   : >> { %s615_s9 = sshll.u32 %s204_s8, 7  ;;  %s1041_s10 = scalar_lea.vmem [#allocation8], %s670_s7 }
  0x2f   : >> { %v678_v1 = vld [vmem:[%s1041_s10 + $0x38] sm:$0xff]  ;;  %s208_s11 = sadd.s32 %s615_s9, %s207_s6  ;;  %s213_s12 = sadd.s32 1, %s1024_s25  ;;  %v677_v2 = vld [vmem:[%s1041_s10 + $0x30] sm:$0xff]  ;;  %v676_v3 = vld [vmem:[%s1041_s10 + $0x28] sm:$0xff] }
  0x30   : >> { %s209_s13 = sld [smem:[#allocation4 + %s208_s11]]  ;;  %s214_s14 = sshra.s32 %s213_s12, 7  ;;  %465 = vmatpush.bf16.msra.mxu0 %v678_v1  ;;  %v675_v5 = vld [vmem:[%s1041_s10 + $0x20] sm:$0xff]  ;;  %v674_v7 = vld [vmem:[%s1041_s10 + $0x18] sm:$0xff]  ;;  %v673_v9 = vld [vmem:[%s1041_s10 + $0x10] sm:$0xff] }
  0x31   : >> { %s216_s15 = sadd.s32 %s909_s5, %s214_s14  ;;  %s219_s16 = sand.u32 127, %s213_s12  ;;  %v672_v11 = vld [vmem:[%s1041_s10 + $0x8] sm:$0xff]  ;;  %v671_v13 = vld [vmem:[%s1041_s10] sm:$0xff] }
  0x32   : >> { %s616_s17 = sshll.u32 %s216_s15, 7  ;;  %s225_s18 = sadd.s32 2, %s1024_s25  ;;  %v393_v28 = vld [vmem:[%s1028_s30] sm:$0xff]  ;;  %v394_v31 = vld [vmem:[%s1028_s30 + $0x8] sm:$0xff] }
  0x33   : >> { %s220_s26 = sadd.s32 %s616_s17, %s219_s16  ;;  %s226_s0 = sshra.s32 %s225_s18, 7 }
  0x34   : >> { %s221_s7 = sld [smem:[#allocation4 + %s220_s26]]  ;;  %s228_s8 = sadd.s32 %s909_s5, %s226_s0  ;;  %466 = vmatpush.bf16.msra.mxu0 %v677_v2 }
  0x35   : >> { %s617_s6 = sshll.u32 %s228_s8, 7  ;;  %s231_s9 = sand.u32 127, %s225_s18 }
  0x36   : >> { %s232_s11 = sadd.s32 %s617_s6, %s231_s9  ;;  %s210_s23 = scalar_lea.vmem [#allocation5], %s209_s13 }
  0x37   : >> { %v211_v4 = vld [vmem:[%s210_s23] sm:$0x1]  ;;  %s233_s1 = sld [smem:[#allocation4 + %s232_s11]]  ;;  %s237_s14 = sadd.s32 3, %s1024_s25 }
  0x38   : >> { %212 = vst [vmem:[#allocation2] sm:$0x1] %v211_v4  ;;  %s238_s12 = sshra.s32 %s237_s14, 7  ;;  %s243_s15 = sand.u32 127, %s237_s14  ;;  %467 = vmatpush.bf16.msra.mxu0 %v676_v3 }
  0x39   : >> { %s240_s16 = sadd.s32 %s909_s5, %s238_s12  ;;  %s249_s17 = sadd.s32 4, %s1024_s25 }
  0x3a   : >> { %s618_s26 = sshll.u32 %s240_s16, 7  ;;  %s222_s0 = scalar_lea.vmem [#allocation5], %s221_s7 }
  0x3b   : >> { %v223_v6 = vld [vmem:[%s222_s0] sm:$0x1]  ;;  %s244_s8 = sadd.s32 %s618_s26, %s243_s15  ;;  %s250_s18 = sshra.s32 %s249_s17, 7 }
  0x3c   : >> { %224 = vst [vmem:[#allocation2 + $0x1] sm:$0x1] %v223_v6  ;;  %s245_s23 = sld [smem:[#allocation4 + %s244_s8]]  ;;  %s252_s13 = sadd.s32 %s909_s5, %s250_s18  ;;  %468 = vmatpush.bf16.msra.mxu0 %v675_v5 }
  0x3d   : >> { %s619_s6 = sshll.u32 %s252_s13, 7  ;;  %s234_s9 = scalar_lea.vmem [#allocation5], %s233_s1 }
  0x3e   : >> { %v235_v8 = vld [vmem:[%s234_s9] sm:$0x1]  ;;  %s255_s11 = sand.u32 127, %s249_s17  ;;  %s261_s14 = sadd.s32 5, %s1024_s25 }
  0x3f   : >> { %236 = vst [vmem:[#allocation2 + $0x2] sm:$0x1] %v235_v8  ;;  %s256_s12 = sadd.s32 %s619_s6, %s255_s11  ;;  %s262_s16 = sshra.s32 %s261_s14, 7 }
  0x40   : >> { %s257_s7 = sld [smem:[#allocation4 + %s256_s12]]  ;;  %s264_s15 = sadd.s32 %s909_s5, %s262_s16  ;;  %469 = vmatpush.bf16.msra.mxu0 %v674_v7 }
  0x41   : >> { %s620_s26 = sshll.u32 %s264_s15, 7  ;;  %s267_s0 = sand.u32 127, %s261_s14 }
  0x42   : >> { %s268_s8 = sadd.s32 %s620_s26, %s267_s0  ;;  %s246_s18 = scalar_lea.vmem [#allocation5], %s245_s23 }
  0x43   : >> { %v247_v10 = vld [vmem:[%s246_s18] sm:$0x1]  ;;  %s269_s1 = sld [smem:[#allocation4 + %s268_s8]]  ;;  %s273_s13 = sadd.s32 6, %s1024_s25 }
  0x44   : >> { %248 = vst [vmem:[#allocation2 + $0x3] sm:$0x1] %v247_v10  ;;  %s274_s17 = sshra.s32 %s273_s13, 7  ;;  %s279_s6 = sand.u32 127, %s273_s13  ;;  %470 = vmatpush.bf16.msra.mxu0 %v673_v9 }
  0x45   : >> { %s276_s9 = sadd.s32 %s909_s5, %s274_s17  ;;  %s285_s11 = sadd.s32 7, %s1024_s25 }
  0x46   : >> { %s621_s12 = sshll.u32 %s276_s9, 7  ;;  %s258_s16 = scalar_lea.vmem [#allocation5], %s257_s7 }
  0x47   : >> { %v259_v12 = vld [vmem:[%s258_s16] sm:$0x1]  ;;  %s280_s15 = sadd.s32 %s621_s12, %s279_s6  ;;  %s286_s14 = sshra.s32 %s285_s11, 7 }
  0x48   : >> { %260 = vst [vmem:[#allocation2 + $0x4] sm:$0x1] %v259_v12  ;;  %s281_s23 = sld [smem:[#allocation4 + %s280_s15]]  ;;  %s288_s26 = sadd.s32 %s909_s5, %s286_s14  ;;  %471 = vmatpush.bf16.msra.mxu0 %v672_v11 }
  0x49   : >> { %s622_s0 = sshll.u32 %s288_s26, 7  ;;  %s270_s8 = scalar_lea.vmem [#allocation5], %s269_s1 }
  0x4a   : >> { %v271_v14 = vld [vmem:[%s270_s8] sm:$0x1]  ;;  %s291_s18 = sand.u32 127, %s285_s11  ;;  %s297_s13 = sadd.s32 8, %s1024_s25 }
  0x4b   : >> { %272 = vst [vmem:[#allocation2 + $0x5] sm:$0x1] %v271_v14  ;;  %s292_s17 = sadd.s32 %s622_s0, %s291_s18  ;;  %s298_s7 = sshra.s32 %s297_s13, 7 }
  0x4c   : >> { %s293_s9 = sld [smem:[#allocation4 + %s292_s17]]  ;;  %s300_s6 = sadd.s32 %s909_s5, %s298_s7  ;;  %472 = vmatpush.bf16.msra.mxu0 %v671_v13 }
  0x4d   : >> { %s623_s12 = sshll.u32 %s300_s6, 7  ;;  %s303_s16 = sand.u32 127, %s297_s13 }
  0x4e   : >> { %s304_s15 = sadd.s32 %s623_s12, %s303_s16  ;;  %s282_s14 = scalar_lea.vmem [#allocation5], %s281_s23 }
  0x4f   : >> { %v283_v15 = vld [vmem:[%s282_s14] sm:$0x1]  ;;  %s305_s10 = sld [smem:[#allocation4 + %s304_s15]]  ;;  %s309_s1 = sadd.s32 9, %s1024_s25 }
  0x50   : >> { %284 = vst [vmem:[#allocation2 + $0x6] sm:$0x1] %v283_v15  ;;  %s310_s26 = sshra.s32 %s309_s1, 7  ;;  %s315_s11 = sand.u32 127, %s309_s1 }
  0x51   : >> { %s312_s8 = sadd.s32 %s909_s5, %s310_s26  ;;  %s321_s2 = sadd.s32 10, %s1024_s25 }
  0x52   : >> { %s624_s0 = sshll.u32 %s312_s8, 7  ;;  %s294_s18 = scalar_lea.vmem [#allocation5], %s293_s9 }
  0x53   : >> { %v295_v16 = vld [vmem:[%s294_s18] sm:$0x1]  ;;  %s316_s17 = sadd.s32 %s624_s0, %s315_s11  ;;  %s322_s7 = sshra.s32 %s321_s2, 7 }
  0x54   : >> { %296 = vst [vmem:[#allocation2 + $0x7] sm:$0x1] %v295_v16  ;;  %s317_s13 = sld [smem:[#allocation4 + %s316_s17]]  ;;  %s324_s6 = sadd.s32 %s909_s5, %s322_s7 }
  0x55   : >> { %s625_s23 = sshll.u32 %s324_s6, 7  ;;  %s306_s12 = scalar_lea.vmem [#allocation5], %s305_s10 }
  0x56   : >> { %v307_v17 = vld [vmem:[%s306_s12] sm:$0x1]  ;;  %s327_s16 = sand.u32 127, %s321_s2  ;;  %s333_s15 = sadd.s32 11, %s1024_s25 }
  0x57   : >> { %308 = vst [vmem:[#allocation2 + $0x8] sm:$0x1] %v307_v17  ;;  %s328_s14 = sadd.s32 %s625_s23, %s327_s16  ;;  %s334_s1 = sshra.s32 %s333_s15, 7 }
  0x58   : >> { %s329_s26 = sld [smem:[#allocation4 + %s328_s14]]  ;;  %s336_s9 = sadd.s32 %s909_s5, %s334_s1 }
  0x59   : >> { %s626_s8 = sshll.u32 %s336_s9, 7  ;;  %s339_s18 = sand.u32 127, %s333_s15 }
  0x5a   : >> { %s340_s11 = sadd.s32 %s626_s8, %s339_s18  ;;  %s318_s0 = scalar_lea.vmem [#allocation5], %s317_s13 }
  0x5b   : >> { %v319_v18 = vld [vmem:[%s318_s0] sm:$0x1]  ;;  %s341_s17 = sld [smem:[#allocation4 + %s340_s11]]  ;;  %s345_s7 = sadd.s32 12, %s1024_s25 }
  0x5c   : >> { %320 = vst [vmem:[#allocation2 + $0x9] sm:$0x1] %v319_v18  ;;  %s346_s10 = sshra.s32 %s345_s7, 7  ;;  %s351_s2 = sand.u32 127, %s345_s7  ;;  %v395_v25 = vld [vmem:[#allocation2] sm:$0xff] }
  0x5d   : >> { %s348_s6 = sadd.s32 %s909_s5, %s346_s10  ;;  %s357_s12 = sadd.s32 13, %s1024_s25 }
  0x5e   : >> { %s627_s27 = sshll.u32 %s348_s6, 7  ;;  %s330_s21 = scalar_lea.vmem [#allocation5], %s329_s26 }
  0x5f   : >> { %v331_v19 = vld [vmem:[%s330_s21] sm:$0x1]  ;;  %s352_s23 = sadd.s32 %s627_s27, %s351_s2  ;;  %s358_s16 = sshra.s32 %s357_s12, 7 }
  0x60   : >> { %332 = vst [vmem:[#allocation2 + $0xa] sm:$0x1] %v331_v19  ;;  %s353_s15 = sld [smem:[#allocation4 + %s352_s23]]  ;;  %s360_s14 = sadd.s32 %s909_s5, %s358_s16 }
  0x61   : >> { %s628_s13 = sshll.u32 %s360_s14, 7  ;;  %s342_s1 = scalar_lea.vmem [#allocation5], %s341_s17 }
  0x62   : >> { %v343_v20 = vld [vmem:[%s342_s1] sm:$0x1]  ;;  %s363_s9 = sand.u32 127, %s357_s12  ;;  %s369_s8 = sadd.s32 14, %s1024_s25 }
  0x63   : >> { %344 = vst [vmem:[#allocation2 + $0xb] sm:$0x1] %v343_v20  ;;  %s364_s18 = sadd.s32 %s628_s13, %s363_s9  ;;  %s370_s11 = sshra.s32 %s369_s8, 7 }
  0x64   : >> { %s365_s0 = sld [smem:[#allocation4 + %s364_s18]]  ;;  %s372_s7 = sadd.s32 %s909_s5, %s370_s11 }
  0x65   : >> { %s629_s26 = sshll.u32 %s372_s7, 7  ;;  %s375_s10 = sand.u32 127, %s369_s8 }
  0x66   : >> { %s376_s21 = sadd.s32 %s629_s26, %s375_s10  ;;  %s354_s27 = scalar_lea.vmem [#allocation5], %s353_s15 }
  0x67   : >> { %v355_v21 = vld [vmem:[%s354_s27] sm:$0x1]  ;;  %s377_s2 = sld [smem:[#allocation4 + %s376_s21]]  ;;  %s381_s6 = sadd.s32 15, %s1024_s25 }
  0x68   : >> { %356 = vst [vmem:[#allocation2 + $0xc] sm:$0x1] %v355_v21  ;;  %s382_s23 = sshra.s32 %s381_s6, 7  ;;  %s387_s16 = sand.u32 127, %s381_s6 }
  0x69   : >> { %s384_s17 = sadd.s32 %s909_s5, %s382_s23  ;;  %s201_s5 = sadd.s32 1, %s909_s5  }
  0x6a   : >> { %s630_s14 = sshll.u32 %s384_s17, 7  ;;  %s366_s12 = scalar_lea.vmem [#allocation5], %s365_s0 }
  0x6b   : >> { %v367_v22 = vld [vmem:[%s366_s12] sm:$0x1]  ;;  %s388_s1 = sadd.s32 %s630_s14, %s387_s16  ;;  %p198_p13 = scmp.ge.s32.totalorder %s201_s5, 27  }
  0x6c   : >> { %368 = vst [vmem:[#allocation2 + $0xd] sm:$0x1] %v367_v22  ;;  %s389_s13 = sld [smem:[#allocation4 + %s388_s1]]  ;;  %v756_v35 = vld [vmem:[%s1135_s3] ss:$0 sm:$0xff] (%p198_p13)  ;;  %s507_s7 = scalar_lea.hbm (%p198_p13), %s1136_s4, %s1024_s25 }
  0x6d   : >> { %s378_s9 = scalar_lea.vmem [#allocation5], %s377_s2  ;;  %s508_s5 = sshll.u32 (%p198_p13), %s1028_s30, 4  ;;  %s509_s5 = int_to_ptr.vmem [resolvable:$true] %s508_s5 }
  0x6e   : >> { %v379_v23 = vld [vmem:[%s378_s9] sm:$0x1]  ;;  %s1098_s26 = sshll.u32 (%p198_p13), %s507_s7, 4  ;;  %s1148_s10 = sand.u32 (%p198_p13), 1, %s897_s20   ;;  %s511_s26 = int_to_ptr.hbm [resolvable:$true] %s1098_s26 }
  0x6f   : >> { %380 = vst [vmem:[#allocation2 + $0xe] sm:$0x1] %v379_v23  ;;  %s496_s21 = scalar_lea.sflag (%p198_p13), [#allocation7], %s1148_s10  ;;  %s843_s27 = sshra.s32 (%p198_p13), %s511_s26, 4  ;;  %s844_s27 = int_to_ptr.hbm [resolvable:$true] %s843_s27 }
  0x70   : > { %s845_s2 = scalar_lea.hbm (%p198_p13), %s844_s27, 16  ;;  %s849_s23 = scalar_lea.hbm (%p198_p13), %s1136_s4, 32 }
  0x71   : > { %p846_p0 = scmp.ne.s32.totalorder (%p198_p13), %s844_s27, %s845_s2  ;;  %p850_p3 = scmp.lt.s32.totalorder (%p198_p13), %s844_s27, %s1136_s4 }
  0x72   : >> { %s390_s15 = scalar_lea.vmem [#allocation5], %s389_s13  ;;  %p851_p4 = scmp.lt.s32.totalorder (%p198_p13), %s849_s23, %s845_s2 }
  0x73   : >> { %v391_v24 = vld [vmem:[%s390_s15] sm:$0x1]  ;;  %p847_p1 = pnand (%p198_p13), %p846_p0, %p987_p5 }
  0x74   : >> { %392 = vst [vmem:[#allocation2 + $0xf] sm:$0x1] %v391_v24  ;;  %p852_p7 = por (%p198_p13), %p851_p4, %p850_p3 }
  0x75   : > { %p848_p2 = pneg (%p198_p13), %p847_p1 }
  0x77   : > { %p853_p8 = pnand (%p198_p13), %p852_p7, %p848_p2 }
  0x7b   : >> { %v396_v26 = vld [vmem:[#allocation2 + $0x8] sm:$0xff] }
  0x7c   : >> { %v397_v27 = vpack.c.bf16 %v396_v26, %v395_v25 }
  0x7e   : >> { %473 = vmatmul.bf16.vlgmr.msra.gmra.mxu0 %v397_v27 }
  0xfb   : >> { %v474_v29 = vpop.f32.mrf.mxu0 }
  0xfc   : >> { %v479_v30 = vadd.f32 %v474_v29, %v393_v28 }
  0xfe   : >> { %481 = vst [vmem:[%s1028_s30] sm:$0xff] %v479_v30 }
 0x102   : > { %200 = sbr.rel (!%p198_p13) target bundleno = 44 (0x2c), region = 97 }
 0x103   : >> { %v476_v32 = vpop.f32.mrf.mxu0 }
 0x104   : >> { %v480_v33 = vadd.f32 %v476_v32, %v394_v31 }
 0x105   : > { %v483_v34 = vld [vmem:[%s1028_s30] sm:$0xff] (%p198_p13) }
 0x106   : >> { %482 = vst [vmem:[%s1028_s30 + $0x8] sm:$0xff] %v480_v33  ;;  %v489_v37 = vadd.f32 (%p198_p13), %v756_v35, %v483_v34 }
 0x108   : > { %v491_v39 = vmax.f32 %v489_v37, 0.0 }
 0x10a   : > { %493 = vst [vmem:[%s1028_s30] sm:$0xff] %v491_v39 }
 0x10d   : > { %v484_v36 = vld [vmem:[%s1028_s30 + $0x8] sm:$0xff] }
 0x10e   : > { %v490_v38 = vadd.f32 %v756_v35, %v484_v36 }
 0x110   : > { %v492_v40 = vmax.f32 %v490_v38, 0.0 }
 0x112   : > { %494 = vst [vmem:[%s1028_s30 + $0x8] sm:$0xff] %v492_v40 }
 0x113   : > { %856 = shalt.err (!%p853_p8)
}
 0x114   : > { %s919_s30 = smov 128   ;;  %s920_s14 = smov 8  }
 0x115   : > { %688 = dma.vmem_to_hbm [thread:$0]  (%p987_p5), %s509_s5, 256, %s511_s26, %s496_s21, %s919_s30, %s919_s30, %s920_s14  }
 0x116 PF: > { %p705_p9 = scmp.ge.s32.totalorder %s905_s22, 2  ;;  %s525_s12 = sand.u32 1, %s893_s19  }
 0x117   : > { %s526_s1 = scalar_lea.sflag [#allocation7], %s525_s12 }
 0x118   : > { %p698_p10 = pnand %p705_p9, %p991_p6 }
 0x11a   : > { %p699_p11 = pneg %p698_p10 }
 0x11c   : > { %888 = dma.done.wait (%p699_p11), %s526_s1, 256  }
 0x11d   : > { %890 = vsyncadd (%p699_p11), %s526_s1, 4294967040  ;;  %s1149_s13 = sld [smem:[#allocation15_spill]]  ;;  %p24_p12 = scmp.ge.s32.totalorder %s974_s24, 4  }
 0x11e   : > { %s1150_s21 = sld [smem:[#allocation16_spill]]  ;;  %s1151_s19 = smov %s897_s20 }
 0x11f   : > { %s1153_s22 = smov %s974_s24  ;;  %26 = sbr.rel (!%p24_p12) target bundleno = 12 (0xc), region = 108 }
 0x123   : > { %s1152_s20 = smov %s1149_s13 }
 0x124   :  { %532 = vsyncpa [#allocation6], 1 }
 0x125   :  { %534 = vsyncpa [#allocation6 + $0x1], 1 }
 0x126   :  { %535 = vsyncpa [#allocation9], 1 }
 0x127   :  { %536 = vsyncpa [#allocation7], 1 }
 0x128   :  { %538 = vsyncpa [#allocation7 + $0x1], 1 }

</bundles_post_ra>
